<compile_context>
chip_gen: v7x
topology: tpu7x:2x2x1
jax: 0.10.0
libtpu: 0.0.40
codegen_flags: <defaults>
</compile_context>

<pallas_src>
import functools

import jax
import jax.numpy as jnp
from jax.experimental import pallas as pl
from jax.experimental.pallas import tpu as pltpu

_LANE = 128
_SUBLANE = 8


def _round_up(n, m):
    return ((n + m - 1) // m) * m


def make_actor_kernel(num_layers, action_max, compute_dtype):
    """Fused MLP kernel: num_layers Linear layers.

    refs = (x_ref, w0, b0, w1, b1, ..., w_{L-1}, b_{L-1}, o_ref)
    Hidden layers use ReLU; last layer uses Tanh scaled by action_max.
    Matmul inputs are `compute_dtype` (bf16 on v6e/v7x), accumulation and all
    elementwise math are f32.
    """
    def kernel(*refs):
        x_ref = refs[0]
        o_ref = refs[-1]
        param_refs = refs[1:-1]
        h = x_ref[...]                               # (TB, 128k) compute_dtype
        for i in range(num_layers):
            w = param_refs[2 * i][...]               # (in_p, out_p) compute_dtype
            b = param_refs[2 * i + 1][...]           # (1, out_p)   float32
            y = jnp.dot(h, w, preferred_element_type=jnp.float32) + b
            if i < num_layers - 1:
                h = jnp.maximum(y, 0.0).astype(compute_dtype)   # ReLU (VPU, f32)
            else:
                h = jnp.tanh(y)                                 # Tanh (EUP, f32)
        o_ref[...] = (jnp.float32(action_max) * h).astype(o_ref.dtype)
    return kernel


def init_actor_params(key, input_dim, action_dim, actor_dims):
    """Deterministic init matching the PyTorch module's __init__.

    fan_in_init(weight): uniform(-1/sqrt(in_features), +1/sqrt(in_features))
    fan_in_init(bias):   uniform(-1/sqrt(out_features), +1/sqrt(out_features))
    final layer: weight uniform(-0.003, 0.003), bias uniform(-0.0003, 0.0003)

    Returns a flat f32 list [w0_t, b0, w1_t, b1, ...] with weights transposed
    to (in, out) and biases shaped (1, out). Padding/casting happens in the
    forward wrapper.
    """
    dims = [input_dim] + list(actor_dims)
    params = []
    for i in range(len(dims) - 1):
        d_in, d_out = dims[i], dims[i + 1]
        key, kw, kb = jax.random.split(key, 3)
        w_bound = 1.0 / jnp.sqrt(jnp.float32(d_in))
        b_bound = 1.0 / jnp.sqrt(jnp.float32(d_out))
        w = jax.random.uniform(kw, (d_in, d_out), jnp.float32,
                               minval=-w_bound, maxval=w_bound)
        b = jax.random.uniform(kb, (1, d_out), jnp.float32,
                               minval=-b_bound, maxval=b_bound)
        params += [w, b]
    d_in, d_out = dims[-1], action_dim
    key, kw, kb = jax.random.split(key, 3)
    w = jax.random.uniform(kw, (d_in, d_out), jnp.float32,
                           minval=-0.003, maxval=0.003)
    b = jax.random.uniform(kb, (1, d_out), jnp.float32,
                           minval=-0.0003, maxval=0.0003)
    params += [w, b]
    return params


@functools.partial(jax.jit,
                   static_argnames=("action_dim", "action_max",
                                    "compute_dtype", "batch_tile"))
def actor_forward(x, params, action_dim, action_max, *,
                  compute_dtype=jnp.bfloat16, batch_tile=512):
    """Runs the fused Actor MLP in a single pallas_call.

    Feature dims are zero-padded to 128 (lane-dense, numerically exact through
    Linear+ReLU since padded weight rows/cols and bias lanes are zero); the
    batch is tiled and gridded so x/out DMAs pipeline behind the MXU work.
    """
    num_layers = len(params) // 2
    batch, input_dim = x.shape

    # Batch tiling: tile must be a sublane multiple; pad batch to the tile.
    tb = min(batch_tile, _round_up(batch, _SUBLANE))
    padded_batch = _round_up(batch, tb)
    num_tiles = padded_batch // tb

    # Pad/cast input to (padded_batch, 128k) in compute dtype.
    in_pad = _round_up(input_dim, _LANE)
    x_p = jnp.zeros((padded_batch, in_pad), compute_dtype)
    x_p = x_p.at[:batch, :input_dim].set(x.astype(compute_dtype))

    in_specs = [pl.BlockSpec((tb, in_pad), lambda i: (i, 0))]
    padded_params = []
    flops = 0
    bytes_accessed = x_p.size * x_p.dtype.itemsize
    out_pad = in_pad
    for li in range(num_layers):
        w, b = params[2 * li], params[2 * li + 1]
        d_in, d_out = w.shape
        di_p, do_p = _round_up(d_in, _LANE), _round_up(d_out, _LANE)
        w_p = jnp.zeros((di_p, do_p), compute_dtype)
        w_p = w_p.at[:d_in, :d_out].set(w.astype(compute_dtype))
        b_p = jnp.zeros((1, do_p), jnp.float32)
        b_p = b_p.at[:, :d_out].set(b.reshape(1, d_out).astype(jnp.float32))
        padded_params += [w_p, b_p]
        # Weights/biases are full VMEM residents (same block for every step).
        in_specs += [pl.BlockSpec((di_p, do_p), lambda i: (0, 0)),
                     pl.BlockSpec((1, do_p), lambda i: (0, 0))]
        flops += 2 * padded_batch * di_p * do_p
        bytes_accessed += (w_p.size * w_p.dtype.itemsize
                           + b_p.size * b_p.dtype.itemsize)
        out_pad = do_p

    out_shape = jax.ShapeDtypeStruct((padded_batch, out_pad), jnp.float32)
    bytes_accessed += padded_batch * out_pad * 4
    cost = pl.CostEstimate(flops=flops,
                           transcendentals=padded_batch * out_pad,
                           bytes_accessed=bytes_accessed)

    kernel = make_actor_kernel(num_layers, action_max, compute_dtype)
    out_padded = pl.pallas_call(
        kernel,
        out_shape=out_shape,
        grid=(num_tiles,),
        in_specs=in_specs,
        out_specs=pl.BlockSpec((tb, out_pad), lambda i: (i, 0)),
        compiler_params=pltpu.CompilerParams(
            dimension_semantics=("parallel",),   # shards across v7x's 2 TCs
            vmem_limit_bytes=64 * 1024 * 1024,   # within v7x 64 MiB VMEM
        ),
        cost_estimate=cost,
    )(x_p, *padded_params)

    # Slice padded batch rows / padded action lanes back off.
    return out_padded[:batch, :action_dim]


def actor_forward_ref(x, params, action_max, compute_dtype=jnp.bfloat16):
    """Pure-JAX reference mirroring the kernel's bf16-in / f32-accumulate math."""
    num_layers = len(params) // 2
    h = x.astype(compute_dtype)
    for i in range(num_layers):
        w = params[2 * i].astype(compute_dtype)
        b = params[2 * i + 1].astype(jnp.float32).reshape(1, -1)
        y = jnp.dot(h, w, preferred_element_type=jnp.float32) + b
        if i < num_layers - 1:
            h = jnp.maximum(y, 0.0).astype(compute_dtype)
        else:
            h = jnp.tanh(y)
    return jnp.float32(action_max) * h


if __name__ == "__main__":
    # Small, module-consistent shapes.
    batch = 8
    input_dim = 16
    actor_dims = (64, 32)
    action_dim = 4
    action_max = 2.0

    key = jax.random.PRNGKey(0)
    key, kx = jax.random.split(key)
    x = jax.random.normal(kx, (batch, input_dim), jnp.float32)

    params = init_actor_params(key, input_dim, action_dim, actor_dims)

    out = actor_forward(x, params, action_dim, action_max)
    out = jax.block_until_ready(out)

    ref = actor_forward_ref(x, params, action_max)
    assert out.shape == (batch, action_dim)
    assert jnp.allclose(out, ref, atol=2e-3, rtol=2e-3), (
        f"max abs err {jnp.max(jnp.abs(out - ref))}")

    print("KERNEL_OK")
</pallas_src>

<mosaic_0001>
module attributes {stable_mosaic.version = 11 : i64} {
  func.func @kernel(%arg0: i32, %arg1: memref<8x128xbf16, #tpu.memory_space<vmem>>, %arg2: memref<128x128xbf16, #tpu.memory_space<vmem>>, %arg3: memref<1x128xf32, #tpu.memory_space<vmem>>, %arg4: memref<128x128xbf16, #tpu.memory_space<vmem>>, %arg5: memref<1x128xf32, #tpu.memory_space<vmem>>, %arg6: memref<128x128xbf16, #tpu.memory_space<vmem>>, %arg7: memref<1x128xf32, #tpu.memory_space<vmem>>, %arg8: memref<8x128xf32, #tpu.memory_space<vmem>>) attributes {dimension_semantics = [#tpu.dimension_semantics<parallel>], iteration_bounds = array<i64: 1>, scalar_prefetch = 0 : i64, scratch_operands = 0 : i64, tpu.core_type = #tpu.core_type<tc>, window_params = [{transform_indices = @transform_0, window_bounds = array<i64: 8, 128>}, {pipeline_mode = #tpu.pipeline_mode<synchronous>, transform_indices = @transform_1, window_bounds = array<i64: 128, 128>}, {pipeline_mode = #tpu.pipeline_mode<synchronous>, transform_indices = @transform_2, window_bounds = array<i64: 1, 128>}, {pipeline_mode = #tpu.pipeline_mode<synchronous>, transform_indices = @transform_3, window_bounds = array<i64: 128, 128>}, {pipeline_mode = #tpu.pipeline_mode<synchronous>, transform_indices = @transform_4, window_bounds = array<i64: 1, 128>}, {pipeline_mode = #tpu.pipeline_mode<synchronous>, transform_indices = @transform_5, window_bounds = array<i64: 128, 128>}, {pipeline_mode = #tpu.pipeline_mode<synchronous>, transform_indices = @transform_6, window_bounds = array<i64: 1, 128>}, {transform_indices = @transform_7, window_bounds = array<i64: 8, 128>}]} {
    %c0 = arith.constant 0 : index
    %c0_0 = arith.constant 0 : index
    %0 = vector.load %arg1[%c0, %c0_0] : memref<8x128xbf16, #tpu.memory_space<vmem>>, vector<8x128xbf16>
    %c0_1 = arith.constant 0 : index
    %c0_2 = arith.constant 0 : index
    %1 = vector.load %arg2[%c0_1, %c0_2] : memref<128x128xbf16, #tpu.memory_space<vmem>>, vector<128x128xbf16>
    %c0_3 = arith.constant 0 : index
    %c0_4 = arith.constant 0 : index
    %2 = vector.load %arg3[%c0_3, %c0_4] : memref<1x128xf32, #tpu.memory_space<vmem>>, vector<1x128xf32>
    %cst = arith.constant dense<0.000000e+00> : vector<8x128xf32>
    %3 = tpu.matmul %0, %1, %cst {dimension_numbers = #tpu.dot_dimension_numbers<[1], [0], [0], [1], [0, 0, 1, 1], [], []>} : vector<8x128xbf16>, vector<128x128xbf16>, vector<8x128xf32> -> vector<8x128xf32>
    %4 = vector.broadcast %2 : vector<1x128xf32> to vector<8x128xf32>
    %5 = arith.addf %3, %4 : vector<8x128xf32>
    %cst_5 = arith.constant 0.000000e+00 : f32
    %6 = vector.broadcast %cst_5 : f32 to vector<8x128xf32>
    %7 = arith.maximumf %5, %6 : vector<8x128xf32>
    %8 = arith.truncf %7 : vector<8x128xf32> to vector<8x128xbf16>
    %c0_6 = arith.constant 0 : index
    %c0_7 = arith.constant 0 : index
    %9 = vector.load %arg4[%c0_6, %c0_7] : memref<128x128xbf16, #tpu.memory_space<vmem>>, vector<128x128xbf16>
    %c0_8 = arith.constant 0 : index
    %c0_9 = arith.constant 0 : index
    %10 = vector.load %arg5[%c0_8, %c0_9] : memref<1x128xf32, #tpu.memory_space<vmem>>, vector<1x128xf32>
    %cst_10 = arith.constant dense<0.000000e+00> : vector<8x128xf32>
    %11 = tpu.matmul %8, %9, %cst_10 {dimension_numbers = #tpu.dot_dimension_numbers<[1], [0], [0], [1], [0, 0, 1, 1], [], []>} : vector<8x128xbf16>, vector<128x128xbf16>, vector<8x128xf32> -> vector<8x128xf32>
    %12 = vector.broadcast %10 : vector<1x128xf32> to vector<8x128xf32>
    %13 = arith.addf %11, %12 : vector<8x128xf32>
    %cst_11 = arith.constant 0.000000e+00 : f32
    %14 = vector.broadcast %cst_11 : f32 to vector<8x128xf32>
    %15 = arith.maximumf %13, %14 : vector<8x128xf32>
    %16 = arith.truncf %15 : vector<8x128xf32> to vector<8x128xbf16>
    %c0_12 = arith.constant 0 : index
    %c0_13 = arith.constant 0 : index
    %17 = vector.load %arg6[%c0_12, %c0_13] : memref<128x128xbf16, #tpu.memory_space<vmem>>, vector<128x128xbf16>
    %c0_14 = arith.constant 0 : index
    %c0_15 = arith.constant 0 : index
    %18 = vector.load %arg7[%c0_14, %c0_15] : memref<1x128xf32, #tpu.memory_space<vmem>>, vector<1x128xf32>
    %cst_16 = arith.constant dense<0.000000e+00> : vector<8x128xf32>
    %19 = tpu.matmul %16, %17, %cst_16 {dimension_numbers = #tpu.dot_dimension_numbers<[1], [0], [0], [1], [0, 0, 1, 1], [], []>} : vector<8x128xbf16>, vector<128x128xbf16>, vector<8x128xf32> -> vector<8x128xf32>
    %20 = vector.broadcast %18 : vector<1x128xf32> to vector<8x128xf32>
    %21 = arith.addf %19, %20 : vector<8x128xf32>
    %22 = math.tanh %21 : vector<8x128xf32>
    %cst_17 = arith.constant 2.000000e+00 : f32
    %23 = vector.broadcast %cst_17 : f32 to vector<8x128xf32>
    %24 = arith.mulf %23, %22 : vector<8x128xf32>
    %c0_18 = arith.constant 0 : index
    %c0_19 = arith.constant 0 : index
    %25 = vector.load %arg8[%c0_18, %c0_19] : memref<8x128xf32, #tpu.memory_space<vmem>>, vector<8x128xf32>
    tpu.vector_store %arg8[%c0_18, %c0_19], %24 {strides = array<i32>} : memref<8x128xf32, #tpu.memory_space<vmem>>, vector<8x128xf32>,
    return
  }
  func.func @transform_0(%arg0: i32) -> (i32, i32) {
    %c0_i32 = arith.constant 0 : i32
    %c0_i32_0 = arith.constant 0 : i32
    return %arg0, %c0_i32 : i32, i32
  }
  func.func @transform_1(%arg0: i32) -> (i32, i32) {
    %c0_i32 = arith.constant 0 : i32
    %c0_i32_0 = arith.constant 0 : i32
    %c0_i32_1 = arith.constant 0 : i32
    return %c0_i32, %c0_i32_0 : i32, i32
  }
  func.func @transform_2(%arg0: i32) -> (i32, i32) {
    %c0_i32 = arith.constant 0 : i32
    %c0_i32_0 = arith.constant 0 : i32
    %c0_i32_1 = arith.constant 0 : i32
    return %c0_i32, %c0_i32_0 : i32, i32
  }
  func.func @transform_3(%arg0: i32) -> (i32, i32) {
    %c0_i32 = arith.constant 0 : i32
    %c0_i32_0 = arith.constant 0 : i32
    %c0_i32_1 = arith.constant 0 : i32
    return %c0_i32, %c0_i32_0 : i32, i32
  }
  func.func @transform_4(%arg0: i32) -> (i32, i32) {
    %c0_i32 = arith.constant 0 : i32
    %c0_i32_0 = arith.constant 0 : i32
    %c0_i32_1 = arith.constant 0 : i32
    return %c0_i32, %c0_i32_0 : i32, i32
  }
  func.func @transform_5(%arg0: i32) -> (i32, i32) {
    %c0_i32 = arith.constant 0 : i32
    %c0_i32_0 = arith.constant 0 : i32
    %c0_i32_1 = arith.constant 0 : i32
    return %c0_i32, %c0_i32_0 : i32, i32
  }
  func.func @transform_6(%arg0: i32) -> (i32, i32) {
    %c0_i32 = arith.constant 0 : i32
    %c0_i32_0 = arith.constant 0 : i32
    %c0_i32_1 = arith.constant 0 : i32
    return %c0_i32, %c0_i32_0 : i32, i32
  }
  func.func @transform_7(%arg0: i32) -> (i32, i32) {
    %c0_i32 = arith.constant 0 : i32
    %c0_i32_0 = arith.constant 0 : i32
    return %arg0, %c0_i32 : i32, i32
  }
}

</mosaic_0001>

<bundles_post_ra>
// kernel: actor_forward.1
= control target key start
LH: loop header
LB: loop body
LE: loop exit
PB: predicated region body
PF: predicated region fallthrough
CT: control target
= control target key end

     0   :  { %12 = vsyncpa [#allocation3], 0  ;;  %s999_s0 = inlined_call_operand.hbm [shape: bf16[8,128], index: 0, kind: input, shape index: {}]   ;;  %s1000_s1 = inlined_call_operand.hbm [shape: bf16[128,128], index: 1, kind: input, shape index: {}]   ;;  %s1001_s2 = inlined_call_operand.hbm [shape: f32[1,128], index: 2, kind: input, shape index: {}]   ;;  %s1002_s3 = inlined_call_operand.hbm [shape: bf16[128,128], index: 3, kind: input, shape index: {}]   ;;  %s1003_s4 = inlined_call_operand.hbm [shape: f32[1,128], index: 4, kind: input, shape index: {}]   ;;  %s1004_s5 = inlined_call_operand.hbm [shape: bf16[128,128], index: 5, kind: input, shape index: {}]   ;;  %s1005_s6 = inlined_call_operand.hbm [shape: f32[1,128], index: 6, kind: input, shape index: {}]   ;;  %s1006_s7 = inlined_call_operand.hbm [shape: f32[8,128], index: 7, kind: output, shape index: {}]  }
   0x1   :  { %13 = vsyncpa [#allocation6], 0 }
   0x2   :  { %14 = vsyncpa [#allocation9], 0 }
   0x3   :  { %15 = vsyncpa [#allocation12], 0 }
   0x4   :  { %16 = vsyncpa [#allocation4], 0  ;;  %s812_s24 = smov [#allocation5]   ;;  %s626_s28 = scalar_lea.hbm %s1000_s1, 1024 }
   0x5   :  { %s32_s25 = sshll.u32 %s812_s24, 4  ;;  %p627_p0 = scmp.ne.s32.totalorder %s1000_s1, %s626_s28  ;;  %s33_s25 = int_to_ptr.vmem [resolvable:$true] %s32_s25 }
   0x6   :  { %p630_p1 = scmp.lt.u32.totalorder %s626_s28, %s1000_s1 }
   0x8   :  { %p632_p2 = pnand %p630_p1, %p627_p0 }
   0xa   :  { %635 = shalt.err (!%p632_p2)
}
   0xb   :  { %s636_s10 = scalar_lea.vmem %s33_s25, 1024  ;;  %p641_p4 = scmp.lt.s32.totalorder %s33_s25, %s33_s25 }
   0xc   :  { %p637_p3 = scmp.ne.s32.totalorder %s33_s25, %s636_s10  ;;  %p642_p5 = scmp.lt.s32.totalorder %s636_s10, %s636_s10 }
   0xe   :  { %p643_p6 = por %p642_p5, %p641_p4 }
  0x10   :  { %p644_p7 = pnand %p643_p6, %p637_p3 }
  0x12   :  { %647 = shalt.err (!%p644_p7)
}
  0x13   :  { %s813_s11 = smov 64   ;;  %s814_s12 = smov 4  }
  0x14   :  { %38 = dma.hbm_to_vmem [thread:$0]  %s1000_s1, 1024, %s33_s25, [#allocation6], %s813_s11, %s813_s11, %s814_s12  }
  0x15   :  { %s815_s15 = smov [#allocation8]   ;;  %s816_s17 = smov [#allocation11]  }
  0x16   :  { %s54_s16 = sshll.u32 %s815_s15, 4  ;;  %s76_s18 = sshll.u32 %s816_s17, 4  ;;  %s55_s16 = int_to_ptr.vmem [resolvable:$true] %s54_s16  ;;  %s77_s18 = int_to_ptr.vmem [resolvable:$true] %s76_s18 }
  0x17   :  { %s648_s21 = scalar_lea.hbm %s1002_s3, 1024 }
  0x18   :  { %p649_p8 = scmp.ne.s32.totalorder %s1002_s3, %s648_s21  ;;  %p652_p9 = scmp.lt.u32.totalorder %s648_s21, %s1002_s3 }
  0x1a   :  { %p654_p10 = pnand %p652_p9, %p649_p8 }
  0x1c   :  { %657 = shalt.err (!%p654_p10)
}
  0x1d   :  { %s658_s1 = scalar_lea.vmem %s55_s16, 1024  ;;  %p663_p12 = scmp.lt.s32.totalorder %s55_s16, %s55_s16 }
  0x1e   :  { %p659_p11 = scmp.ne.s32.totalorder %s55_s16, %s658_s1  ;;  %p664_p13 = scmp.lt.s32.totalorder %s658_s1, %s658_s1 }
  0x20   :  { %p665_p0 = por %p664_p13, %p663_p12 }
  0x22   :  { %p666_p1 = pnand %p665_p0, %p659_p11 }
  0x24   :  { %669 = shalt.err (!%p666_p1)
}
  0x25   :  { %60 = dma.hbm_to_vmem [thread:$0]  %s1002_s3, 1024, %s55_s16, [#allocation9], %s813_s11, %s813_s11, %s814_s12  }
  0x26   :  { %s670_s30 = scalar_lea.hbm %s1004_s5, 1024 }
  0x27   :  { %p671_p2 = scmp.ne.s32.totalorder %s1004_s5, %s670_s30  ;;  %p674_p3 = scmp.lt.u32.totalorder %s670_s30, %s1004_s5 }
  0x29   :  { %p676_p4 = pnand %p674_p3, %p671_p2 }
  0x2b   :  { %679 = shalt.err (!%p676_p4)
}
  0x2c   :  { %s680_s14 = scalar_lea.vmem %s77_s18, 1024  ;;  %p685_p6 = scmp.lt.s32.totalorder %s77_s18, %s77_s18 }
  0x2d   :  { %p681_p5 = scmp.ne.s32.totalorder %s77_s18, %s680_s14  ;;  %p686_p7 = scmp.lt.s32.totalorder %s680_s14, %s680_s14 }
  0x2f   :  { %p687_p8 = por %p686_p7, %p685_p6 }
  0x31   :  { %p688_p9 = pnand %p687_p8, %p681_p5 }
  0x33   :  { %691 = shalt.err (!%p688_p9)
}
  0x34   :  { %82 = dma.hbm_to_vmem [thread:$0]  %s1004_s5, 1024, %s77_s18, [#allocation12], %s813_s11, %s813_s11, %s814_s12  }
  0x35   :  { %s817_s16 = smov [#allocation2]   ;;  %s818_s19 = smov [#allocation7]  }
  0x36   :  { %s23_s17 = sshll.u32 %s817_s16, 4  ;;  %s45_s20 = sshll.u32 %s818_s19, 4  ;;  %s24_s17 = int_to_ptr.vmem [resolvable:$true] %s23_s17  ;;  %s46_s20 = int_to_ptr.vmem [resolvable:$true] %s45_s20 }
  0x37   :  { %s692_s23 = scalar_lea.hbm %s999_s0, 64 }
  0x38   :  { %p693_p10 = scmp.ne.s32.totalorder %s999_s0, %s692_s23  ;;  %p696_p11 = scmp.lt.u32.totalorder %s692_s23, %s999_s0 }
  0x3a   :  { %p698_p12 = pnand %p696_p11, %p693_p10 }
  0x3c   :  { %701 = shalt.err (!%p698_p12)
}
  0x3d   :  { %s702_s5 = scalar_lea.vmem %s24_s17, 64  ;;  %p707_p0 = scmp.lt.s32.totalorder %s24_s17, %s24_s17 }
  0x3e   :  { %p703_p13 = scmp.ne.s32.totalorder %s24_s17, %s702_s5  ;;  %p708_p1 = scmp.lt.s32.totalorder %s702_s5, %s702_s5 }
  0x40   :  { %p709_p2 = por %p708_p1, %p707_p0 }
  0x42   :  { %p710_p3 = pnand %p709_p2, %p703_p13 }
  0x44   :  { %713 = shalt.err (!%p710_p3)
}
  0x45   :  { %26 = dma.hbm_to_vmem [thread:$0]  %s999_s0, 64, %s24_s17, [#allocation3]  }
  0x46   :  { %s714_s28 = scalar_lea.hbm %s1001_s2, 16 }
  0x47   :  { %p715_p4 = scmp.ne.s32.totalorder %s1001_s2, %s714_s28  ;;  %p718_p5 = scmp.lt.u32.totalorder %s714_s28, %s1001_s2 }
  0x49   :  { %p720_p6 = pnand %p718_p5, %p715_p4 }
  0x4b   :  { %723 = shalt.err (!%p720_p6)
}
  0x4c   :  { %s724_s10 = scalar_lea.vmem %s46_s20, 16  ;;  %s728_s13 = scalar_lea.vmem %s46_s20, 32 }
  0x4d   :  { %p725_p7 = scmp.ne.s32.totalorder %s46_s20, %s724_s10  ;;  %p729_p8 = scmp.lt.s32.totalorder %s46_s20, %s46_s20 }
  0x4e   :  { %p730_p9 = scmp.lt.s32.totalorder %s728_s13, %s724_s10 }
  0x50   :  { %p731_p10 = por %p730_p9, %p729_p8 }
  0x52   :  { %p732_p11 = pnand %p731_p10, %p725_p7 }
  0x54   :  { %735 = shalt.err (!%p732_p11)
}
  0x55   :  { %48 = dma.hbm_to_vmem [thread:$0]  %s1001_s2, 16, %s46_s20, [#allocation6]  }
  0x56   :  { %s819_s3 = smov [#allocation10]   ;;  %s820_s16 = smov [#allocation13]  }
  0x57   :  { %s67_s15 = sshll.u32 %s819_s3, 4  ;;  %s89_s17 = sshll.u32 %s820_s16, 4  ;;  %s68_s15 = int_to_ptr.vmem [resolvable:$true] %s67_s15  ;;  %s90_s17 = int_to_ptr.vmem [resolvable:$true] %s89_s17 }
  0x58   :  { %s736_s22 = scalar_lea.hbm %s1003_s4, 16 }
  0x59   :  { %p737_p12 = scmp.ne.s32.totalorder %s1003_s4, %s736_s22  ;;  %p740_p13 = scmp.lt.u32.totalorder %s736_s22, %s1003_s4 }
  0x5b   :  { %p742_p0 = pnand %p740_p13, %p737_p12 }
  0x5d   :  { %745 = shalt.err (!%p742_p0)
}
  0x5e   :  { %s746_s2 = scalar_lea.vmem %s68_s15, 16  ;;  %s750_s20 = scalar_lea.vmem %s68_s15, 32 }
  0x5f   :  { %p747_p1 = scmp.ne.s32.totalorder %s68_s15, %s746_s2  ;;  %p751_p2 = scmp.lt.s32.totalorder %s68_s15, %s68_s15 }
  0x60   :  { %p752_p3 = scmp.lt.s32.totalorder %s750_s20, %s746_s2 }
  0x62   :  { %p753_p4 = por %p752_p3, %p751_p2 }
  0x64   :  { %p754_p5 = pnand %p753_p4, %p747_p1 }
  0x66   :  { %757 = shalt.err (!%p754_p5)
}
  0x67   :  { %70 = dma.hbm_to_vmem [thread:$0]  %s1003_s4, 16, %s68_s15, [#allocation9]  }
  0x68   :  { %s758_s18 = scalar_lea.hbm %s1005_s6, 16 }
  0x69   :  { %p759_p6 = scmp.ne.s32.totalorder %s1005_s6, %s758_s18  ;;  %p762_p7 = scmp.lt.u32.totalorder %s758_s18, %s1005_s6 }
  0x6b   :  { %p764_p8 = pnand %p762_p7, %p759_p6 }
  0x6d   :  { %767 = shalt.err (!%p764_p8)
}
  0x6e   :  { %s768_s8 = scalar_lea.vmem %s90_s17, 16  ;;  %s772_s9 = scalar_lea.vmem %s90_s17, 32 }
  0x6f   :  { %p769_p9 = scmp.ne.s32.totalorder %s90_s17, %s768_s8  ;;  %p773_p10 = scmp.lt.s32.totalorder %s90_s17, %s90_s17 }
  0x70   :  { %p774_p11 = scmp.lt.s32.totalorder %s772_s9, %s768_s8 }
  0x72   :  { %p775_p12 = por %p774_p11, %p773_p10 }
  0x74   :  { %p776_p13 = pnand %p775_p12, %p769_p9 }
  0x76   :  { %779 = shalt.err (!%p776_p13)
}
  0x77   :  { %92 = dma.hbm_to_vmem [thread:$0]  %s1005_s6, 16, %s90_s17, [#allocation12]  }
  0x78   :  { %802 = dma.done.wait [#allocation3], 64  }
  0x79   :  { %803 = vsyncadd [#allocation3], 4294967232 }
  0x7a   :  { %804 = dma.done.wait [#allocation6], 1040  }
  0x7b   :  { %805 = vsyncadd [#allocation6], 4294966256 }
  0x7c   :  { %806 = dma.done.wait [#allocation9], 1040  }
  0x7d   :  { %807 = vsyncadd [#allocation9], 4294966256 }
  0x7e   :  { %808 = dma.done.wait [#allocation12], 1040  }
  0x7f   :  { %809 = vsyncadd [#allocation12], 4294966256  ;;  %v821_v0 = vmov 0.0   ;;  %vm822_vm0 = vmmov 0   ;;  %v600_v1 = vld [vmem:[#allocation5] sm:$0xff]   ;;  %v601_v2 = vld [vmem:[#allocation5 + $0x8] sm:$0xff]  }
  0x80   :  { %528 = vmatprep.subr.bf16.mxu0 %v821_v0  ;;  %544 = vmatprep.mubr.msk.bf16.mxu0 %vm822_vm0, %v821_v0  ;;  %v602_v3 = vld [vmem:[#allocation5 + $0x10] sm:$0xff]   ;;  %v608_v4 = vld [vmem:[#allocation8] sm:$0xff]   ;;  %v603_v5 = vld [vmem:[#allocation5 + $0x18] sm:$0xff]   ;;  %s823_s6 = smov [#allocation14]  }
  0x81   :  { %548 = vmatprep.subr.bf16.mxu1 %v821_v0  ;;  %564 = vmatprep.mubr.msk.bf16.mxu1 %vm822_vm0, %v821_v0  ;;  %v609_v6 = vld [vmem:[#allocation8 + $0x8] sm:$0xff]   ;;  %v604_v7 = vld [vmem:[#allocation5 + $0x20] sm:$0xff]   ;;  %v610_v8 = vld [vmem:[#allocation8 + $0x10] sm:$0xff]   ;;  %s462_s13 = sshll.u32 %s823_s6, 4  ;;  %s463_s13 = int_to_ptr.vmem [resolvable:$true] %s462_s13 }
  0x82   :  { %529 = vmatpush3.bf16.msra.mxu0 %v600_v1  ;;  %549 = vmatpush3.bf16.msra.mxu1 %v608_v4  ;;  %v605_v9 = vld [vmem:[#allocation5 + $0x28] sm:$0xff]   ;;  %v611_v10 = vld [vmem:[#allocation8 + $0x18] sm:$0xff]   ;;  %v606_v11 = vld [vmem:[#allocation5 + $0x30] sm:$0xff]   ;;  %s780_s0 = scalar_lea.vmem %s463_s13, 128  ;;  %p785_p1 = scmp.lt.s32.totalorder %s463_s13, %s463_s13 }
  0x83   :  { %530 = vmatprep.subr.bf16.mxu0 %v821_v0  ;;  %550 = vmatprep.subr.bf16.mxu1 %v821_v0  ;;  %v612_v12 = vld [vmem:[#allocation8 + $0x20] sm:$0xff]   ;;  %v607_v13 = vld [vmem:[#allocation5 + $0x38] sm:$0xff]   ;;  %v613_v14 = vld [vmem:[#allocation8 + $0x28] sm:$0xff]   ;;  %p781_p0 = scmp.ne.s32.totalorder %s463_s13, %s780_s0  ;;  %p786_p2 = scmp.lt.s32.totalorder %s780_s0, %s780_s0 }
  0x84   :  { %v115_v15 = vld [vmem:[#allocation2] sm:$0xf]  ;;  %v614_v16 = vld [vmem:[#allocation8 + $0x30] sm:$0xff]   ;;  %v616_v18 = vld [vmem:[#allocation11] sm:$0xff]  }
  0x85   :  { %v615_v17 = vld [vmem:[#allocation8 + $0x38] sm:$0xff]   ;;  %v617_v19 = vld [vmem:[#allocation11 + $0x8] sm:$0xff]   ;;  %v620_v22 = vld [vmem:[#allocation11 + $0x20] sm:$0xff]   ;;  %p787_p3 = por %p786_p2, %p785_p1 }
  0x86   :  { %531 = vmatpush3.bf16.msra.mxu0 %v601_v2  ;;  %551 = vmatpush3.bf16.msra.mxu1 %v609_v6  ;;  %v618_v20 = vld [vmem:[#allocation11 + $0x10] sm:$0xff]   ;;  %v619_v21 = vld [vmem:[#allocation11 + $0x18] sm:$0xff]   ;;  %v621_v23 = vld [vmem:[#allocation11 + $0x28] sm:$0xff]  }
  0x87   :  { %532 = vmatprep.subr.bf16.mxu0 %v821_v0  ;;  %552 = vmatprep.subr.bf16.mxu1 %v821_v0  ;;  %v474_v24 = vld [vmem:[#allocation7] ss:$0 sm:$0xff]  ;;  %v622_v32 = vld [vmem:[#allocation11 + $0x30] sm:$0xff]   ;;  %v483_v34 = vld [vmem:[#allocation10] ss:$0 sm:$0xff]  ;;  %p788_p4 = pnand %p787_p3, %p781_p0 }
  0x88   :  { %v623_v33 = vld [vmem:[#allocation11 + $0x38] sm:$0xff]   ;;  %v492_v42 = vld [vmem:[#allocation13] ss:$0 sm:$0xff] }
  0x8a   :  { %533 = vmatpush3.bf16.msra.mxu0 %v602_v3  ;;  %553 = vmatpush3.bf16.msra.mxu1 %v610_v8 }
  0x8b   :  { %534 = vmatprep.subr.bf16.mxu0 %v821_v0  ;;  %554 = vmatprep.subr.bf16.mxu1 %v821_v0 }
  0x8e   :  { %535 = vmatpush3.bf16.msra.mxu0 %v603_v5  ;;  %555 = vmatpush3.bf16.msra.mxu1 %v611_v10 }
  0x8f   :  { %536 = vmatprep.subr.bf16.mxu0 %v821_v0  ;;  %556 = vmatprep.subr.bf16.mxu1 %v821_v0 }
  0x92   :  { %537 = vmatpush3.bf16.msra.mxu0 %v604_v7  ;;  %557 = vmatpush3.bf16.msra.mxu1 %v612_v12 }
  0x93   :  { %538 = vmatprep.subr.bf16.mxu0 %v821_v0  ;;  %558 = vmatprep.subr.bf16.mxu1 %v821_v0 }
  0x96   :  { %539 = vmatpush3.bf16.msra.mxu0 %v605_v9  ;;  %559 = vmatpush3.bf16.msra.mxu1 %v613_v14 }
  0x97   :  { %540 = vmatprep.subr.bf16.mxu0 %v821_v0  ;;  %560 = vmatprep.subr.bf16.mxu1 %v821_v0 }
  0x9a   :  { %541 = vmatpush3.bf16.msra.mxu0 %v606_v11  ;;  %561 = vmatpush3.bf16.msra.mxu1 %v614_v16 }
  0x9b   :  { %542 = vmatprep.subr.bf16.mxu0 %v821_v0  ;;  %562 = vmatprep.subr.bf16.mxu1 %v821_v0 }
  0x9e   :  { %543 = vmatpush3.bf16.msra.mxu0 %v607_v13  ;;  %563 = vmatpush3.bf16.msra.mxu1 %v615_v17 }
  0x9f   :  { %568 = vmatprep.subr.bf16.mxu0 %v821_v0 }
  0xa1   :  { %545 = vmatmul.mubr.bf16.vlgmr.msra.gmra.mrb[0].mxu0 %v115_v15 }
  0xa2   :  { %584 = vmatprep.mubr.msk.bf16.mxu0 %vm822_vm0, %v821_v0  ;;  %569 = vmatpush3.bf16.msra.mxu0 %v616_v18 }
  0xa3   :  { %570 = vmatprep.subr.bf16.mxu0 %v821_v0 }
  0xa6   :  { %571 = vmatpush3.bf16.msra.mxu0 %v617_v19 }
  0xa7   :  { %572 = vmatprep.subr.bf16.mxu0 %v821_v0 }
  0xaa   :  { %573 = vmatpush3.bf16.msra.mxu0 %v618_v20 }
  0xab   :  { %574 = vmatprep.subr.bf16.mxu0 %v821_v0 }
  0xae   :  { %575 = vmatpush3.bf16.msra.mxu0 %v619_v21 }
  0xaf   :  { %576 = vmatprep.subr.bf16.mxu0 %v821_v0 }
  0xb2   :  { %577 = vmatpush3.bf16.msra.mxu0 %v620_v22 }
  0xb3   :  { %578 = vmatprep.subr.bf16.mxu0 %v821_v0 }
  0xb6   :  { %579 = vmatpush3.bf16.msra.mxu0 %v621_v23 }
  0xb7   :  { %580 = vmatprep.subr.bf16.mxu0 %v821_v0 }
  0xba   :  { %581 = vmatpush3.bf16.msra.mxu0 %v622_v32 }
  0xbb   :  { %582 = vmatprep.subr.bf16.mxu0 %v821_v0 }
  0xbe   :  { %583 = vmatpush3.bf16.msra.mxu0 %v623_v33 }
 0x174   :  { %v221_v25 = vpop.f32.mrb[0].mxu0 }
 0x175   :  { %v222_v26 = vadd.f32 %v474_v24, %v221_v25  ;;  %v546_v27 = vpop.f32.mrb[1].mxu0 }
 0x176   :  { %v224_v28 = vpop.f32.mrb[2].mxu0 }
 0x177   :  { %v227_v29 = vmax.f32 %v222_v26, 0.0  ;;  %v547_v30 = vpop.f32.mrb[3].mxu0 }
 0x179   :  { %v228_v31 = vpack.c.bf16 %v227_v29, %v227_v29 }
 0x17b   :  { %565 = vmatmul.mubr.bf16.vlgmr.msra.gmra.mrb[0].mxu1 %v228_v31 }
 0x24e   :  { %v334_v35 = vpop.f32.mrb[0].mxu1 }
 0x24f   :  { %v335_v36 = vadd.f32 %v483_v34, %v334_v35  ;;  %v566_v37 = vpop.f32.mrb[1].mxu1 }
 0x250   :  { %v337_v38 = vpop.f32.mrb[2].mxu1 }
 0x251   :  { %v340_v39 = vmax.f32 %v335_v36, 0.0  ;;  %v567_v40 = vpop.f32.mrb[3].mxu1 }
 0x253   :  { %v341_v41 = vpack.c.bf16 %v340_v39, %v340_v39 }
 0x255   :  { %585 = vmatmul.mubr.bf16.vlgmr.msra.gmra.mrb[4].mxu0 %v341_v41 }
 0x328   :  { %v447_v43 = vpop.f32.mrb[4].mxu0 }
 0x329   :  { %v448_v44 = vadd.f32 %v492_v42, %v447_v43  ;;  %v586_v45 = vpop.f32.mrb[5].mxu0 }
 0x32a   :  { %v450_v46 = vpop.f32.mrb[6].mxu0 }
 0x32b   :  { %624 = vtanh.f32 %v448_v44  ;;  %v587_v47 = vpop.f32.mrb[7].mxu0 }
 0x335   :  { %v625_v48 = vpop.eup %624 }
 0x336   :  { %v454_v49 = vmul.f32 2.0, %v625_v48 }
 0x338   :  { %455 = vst [vmem:[#allocation14] sm:$0xff] %v454_v49 }
 0x339   :  { %791 = shalt.err (!%p788_p4)
}
 0x33a   :  { %s792_s15 = scalar_lea.hbm %s1006_s7, 128 }
 0x33b   :  { %p793_p5 = scmp.ne.s32.totalorder %s1006_s7, %s792_s15  ;;  %p796_p6 = scmp.lt.u32.totalorder %s792_s15, %s1006_s7 }
 0x33d   :  { %p798_p7 = pnand %p796_p6, %p793_p5 }
 0x33f   :  { %801 = shalt.err (!%p798_p7)
}
 0x340   :  { %465 = dma.vmem_to_hbm [thread:$0]  %s463_s13, 128, %s1006_s7, [#allocation4]  }
 0x341   :  { %810 = dma.done.wait [#allocation4], 128  }
 0x342   :  { %811 = vsyncadd [#allocation4], 4294967168 }
 0x343   :  { %469 = vsyncpa [#allocation3], 1 }
 0x344   :  { %470 = vsyncpa [#allocation6], 1 }
 0x345   :  { %471 = vsyncpa [#allocation9], 1 }
 0x346   :  { %472 = vsyncpa [#allocation12], 1 }
 0x347   :  { %473 = vsyncpa [#allocation4], 1 }

</bundles_post_ra>
